<compile_context>
chip_gen: v7x
topology: tpu7x:2x2x1
jax: 0.10.0
libtpu: 0.0.40
codegen_flags: <defaults>
</compile_context>

<pallas_src>
import jax
import jax.numpy as jnp
from jax.experimental import pallas as pl
from jax.experimental.pallas import tpu as pltpu

R_GAS = 8.31446261815324  # J / (mol K), scipy.constants.R


def _round_up(x, m):
    return ((x + m - 1) // m) * m


def _uptake_kernel(temp_ref, dg_ref, kint_ref, tp_ref, up_ref):
    # One-shot pass: (Nr,1) exp + exact divide, (Nr,Nt) exp.  Runs once per
    # call, so exact precision here is free.
    temp = temp_ref[0, 0]                                    # scalar f32 (SMEM)
    pfact = jnp.exp(dg_ref[...] / (R_GAS * temp))            # (Nr, 1)
    k = kint_ref[...] / (1.0 + pfact)                        # (Nr, 1), exact divide
    rates = k * tp_ref[...]                                  # (Nr, Nt) outer product
    up_ref[...] = (1.0 - jnp.exp(-rates)).astype(up_ref.dtype)


def _matmul_kernel(x_ref, up_ref, out_ref):
    # Pure MXU body: cast the streamed X tile to bf16 (free VPU work hidden
    # under the DMA), bf16 x bf16 matmul with f32 accumulation.
    out_ref[...] = jnp.dot(
        x_ref[...].astype(jnp.bfloat16), up_ref[...],
        preferred_element_type=jnp.float32,
    ).astype(out_ref.dtype)


def deltag_fit_forward(temperature, deltaG, X, k_int, timepoints,
                       out_dtype=jnp.float32):
    """temperature: scalar; deltaG,k_int: (Nr,1); X: (Np,Nr); timepoints: (1,Nt)."""
    Np, Nr = X.shape
    Nt = timepoints.shape[-1]

    dg = jnp.asarray(deltaG, jnp.float32).reshape(Nr, 1)
    ki = jnp.asarray(k_int, jnp.float32).reshape(Nr, 1)
    tp = jnp.asarray(timepoints, jnp.float32).reshape(1, Nt)
    temp_arr = jnp.asarray(temperature, jnp.float32).reshape(1, 1)

    # --- pass 1: uptake (Nr, Nt), one shot, emitted as bf16 resident operand.
    uptake = pl.pallas_call(
        _uptake_kernel,
        out_shape=jax.ShapeDtypeStruct((Nr, Nt), jnp.bfloat16),
        in_specs=[
            pl.BlockSpec(memory_space=pltpu.MemorySpace.SMEM),  # temperature
            pl.BlockSpec(memory_space=pltpu.MemorySpace.VMEM),  # deltaG
            pl.BlockSpec(memory_space=pltpu.MemorySpace.VMEM),  # k_int
            pl.BlockSpec(memory_space=pltpu.MemorySpace.VMEM),  # timepoints
        ],
        out_specs=pl.BlockSpec(memory_space=pltpu.MemorySpace.VMEM),
    )(temp_arr, dg, ki, tp)

    # --- pass 2: out = X @ uptake, tiled over the peptide dimension ----------
    # At least 2 tiles so both v7x TensorCores get work; cap so the
    # double-buffered X tile stays well inside VMEM on every generation.
    x_bytes = jnp.dtype(X.dtype).itemsize
    tm = _round_up(max(-(-Np // 2), 1), 8)
    rows_vmem_cap = max(8, (((12 << 20) // max(2 * Nr * x_bytes, 1)) // 8) * 8)
    TM = max(8, min(tm, 1024, rows_vmem_cap))
    num_tiles = -(-Np // TM)   # ragged last tile: OOB reads feed only masked rows

    out_itemsize = jnp.dtype(out_dtype).itemsize
    need = 2 * (TM * Nr * x_bytes + TM * Nt * out_itemsize) + 2 * Nr * Nt * 2
    vmem_limit = int(min(max(need + (4 << 20), 16 << 20), 48 << 20))

    cost = pl.CostEstimate(
        flops=int(2 * Np * Nr * Nt),
        transcendentals=0,
        bytes_accessed=int(Np * Nr * x_bytes + Np * Nt * out_itemsize
                           + Nr * Nt * 2),
    )

    out = pl.pallas_call(
        _matmul_kernel,
        out_shape=jax.ShapeDtypeStruct((Np, Nt), out_dtype),
        grid=(num_tiles,),
        in_specs=[
            # X row tile, streamed in native dtype (cast to bf16 in-kernel).
            # pipeline_mode=pl.Buffered(3) is a cheap knob here if an xprof
            # trace ever shows exposed DMA between grid steps.
            pl.BlockSpec((TM, Nr), lambda i: (i, 0)),
            # uptake: same block every step -> DMA'd once, VMEM-resident.
            pl.BlockSpec((Nr, Nt), lambda i: (0, 0)),
        ],
        out_specs=pl.BlockSpec((TM, Nt), lambda i: (i, 0)),
        compiler_params=pltpu.CompilerParams(
            dimension_semantics=("parallel",),   # row tiles shard across TCs (v7x)
            vmem_limit_bytes=vmem_limit,
        ),
        cost_estimate=cost,
    )(X, uptake)

    return out


def _reference(temperature, deltaG, X, k_int, timepoints):
    pfact = jnp.exp(deltaG / (R_GAS * temperature))
    uptake = 1.0 - jnp.exp(-jnp.matmul(k_int / (1.0 + pfact), timepoints))
    return jnp.matmul(X, uptake)


if __name__ == "__main__":
    key = jax.random.PRNGKey(0)
    k1, k2, k3, k4 = jax.random.split(key, 4)

    N_peptides, N_residues, N_timepoints = 16, 32, 8

    # Deterministic synthetic "parameter" deltaG (module __init__ arg), J/mol scale.
    deltaG = 20000.0 + 5000.0 * jax.random.normal(k1, (N_residues, 1), jnp.float32)

    temperature = jnp.float32(300.0)                                      # Kelvin
    X = (jax.random.uniform(k2, (N_peptides, N_residues)) > 0.5).astype(jnp.float32)
    k_int = jnp.exp(jax.random.normal(k3, (N_residues, 1), jnp.float32))  # >0 rates
    timepoints = jnp.logspace(-1, 2, N_timepoints).astype(jnp.float32).reshape(1, -1)

    out = deltag_fit_forward(temperature, deltaG, X, k_int, timepoints)
    out = jax.block_until_ready(out)

    ref = _reference(temperature, deltaG, X, k_int, timepoints)
    assert out.shape == (N_peptides, N_timepoints)
    # bf16 X/uptake on the MXU => ~3 significant digits (exact divide used for
    # the protection-factor term; no approx reciprocal).
    assert jnp.allclose(out, ref, rtol=2e-2, atol=2e-2), "mismatch vs reference"

    print("KERNEL_OK")
</pallas_src>

<mosaic_0001>
module attributes {stable_mosaic.version = 11 : i64} {
  func.func @_uptake_kernel(%arg0: memref<1x1xf32, #tpu.memory_space<smem>>, %arg1: memref<32x1xf32, #tpu.memory_space<vmem>>, %arg2: memref<32x1xf32, #tpu.memory_space<vmem>>, %arg3: memref<1x8xf32, #tpu.memory_space<vmem>>, %arg4: memref<32x8xbf16, #tpu.memory_space<vmem>>) attributes {dimension_semantics = [], scalar_prefetch = 0 : i64, scratch_operands = 0 : i64, tpu.core_type = #tpu.core_type<tc>} {
    %c0 = arith.constant 0 : index
    %c0_0 = arith.constant 0 : index
    %0 = memref.load %arg0[%c0, %c0_0] : memref<1x1xf32, #tpu.memory_space<smem>>
    %c0_1 = arith.constant 0 : index
    %c0_2 = arith.constant 0 : index
    %1 = vector.load %arg1[%c0_1, %c0_2] : memref<32x1xf32, #tpu.memory_space<vmem>>, vector<32x1xf32>
    %cst = arith.constant 8.31446266 : f32
    %2 = arith.mulf %cst, %0 : f32
    %3 = vector.broadcast %2 : f32 to vector<32x1xf32>
    %4 = arith.divf %1, %3 : vector<32x1xf32>
    %5 = math.exp %4 : vector<32x1xf32>
    %c0_3 = arith.constant 0 : index
    %c0_4 = arith.constant 0 : index
    %6 = vector.load %arg2[%c0_3, %c0_4] : memref<32x1xf32, #tpu.memory_space<vmem>>, vector<32x1xf32>
    %cst_5 = arith.constant 1.000000e+00 : f32
    %7 = vector.broadcast %cst_5 : f32 to vector<32x1xf32>
    %8 = arith.addf %7, %5 : vector<32x1xf32>
    %9 = arith.divf %6, %8 : vector<32x1xf32>
    %c0_6 = arith.constant 0 : index
    %c0_7 = arith.constant 0 : index
    %10 = vector.load %arg3[%c0_6, %c0_7] : memref<1x8xf32, #tpu.memory_space<vmem>>, vector<1x8xf32>
    %11 = vector.broadcast %9 : vector<32x1xf32> to vector<32x8xf32>
    %12 = vector.broadcast %10 : vector<1x8xf32> to vector<32x8xf32>
    %13 = arith.mulf %11, %12 : vector<32x8xf32>
    %cst_8 = arith.constant 0.000000e+00 : f32
    %14 = vector.broadcast %cst_8 : f32 to vector<32x8xf32>
    %15 = arith.subf %14, %13 : vector<32x8xf32>
    %16 = math.exp %15 : vector<32x8xf32>
    %cst_9 = arith.constant 1.000000e+00 : f32
    %17 = vector.broadcast %cst_9 : f32 to vector<32x8xf32>
    %18 = arith.subf %17, %16 : vector<32x8xf32>
    %19 = arith.truncf %18 : vector<32x8xf32> to vector<32x8xbf16>
    %c0_10 = arith.constant 0 : index
    %c0_11 = arith.constant 0 : index
    %20 = vector.load %arg4[%c0_10, %c0_11] : memref<32x8xbf16, #tpu.memory_space<vmem>>, vector<32x8xbf16>
    tpu.vector_store %arg4[%c0_10, %c0_11], %19 {strides = array<i32>} : memref<32x8xbf16, #tpu.memory_space<vmem>>, vector<32x8xbf16>,
    return
  }
}

</mosaic_0001>

<bundles_post_ra>
// kernel: tpu_custom_call.1
= control target key start
LH: loop header
LB: loop body
LE: loop exit
PB: predicated region body
PF: predicated region fallthrough
CT: control target
= control target key end

     0   :  { %v164_v0 = vmov 0   ;;  %vm117_vm0 = vcmask 60416   ;;  %s232_s0 = inlined_call_operand.<no memory space> [shape: f32[1,1], index: 0, kind: input, shape index: {}]   ;;  %s233_s1 = inlined_call_operand.vmem [shape: f32[32,1], index: 1, kind: input, shape index: {}]   ;;  %s234_s2 = inlined_call_operand.vmem [shape: f32[32,1], index: 2, kind: input, shape index: {}]   ;;  %s235_s3 = inlined_call_operand.vmem [shape: f32[1,8], index: 3, kind: input, shape index: {}]   ;;  %s236_s4 = inlined_call_operand.vmem [shape: bf16[32,8], index: 4, kind: output, shape index: {}]  }
   0x1   :  { %137 = vset.pattern.permute.xlu1 %v164_v0  ;;  %136 = vset.pattern.permute.xlu0 %v164_v0  ;;  %s23_s17 = smul.f32 8.314463, %s232_s0  ;;  %v21_v2 = vld [vmem:[%s233_s1 + $0x10] sm:$0xff]  ;;  %v19_v3 = vld [vmem:[%s233_s1] sm:$0xff]  ;;  %v22_v4 = vld [vmem:[%s233_s1 + $0x18] sm:$0xff] }
   0x2   :  { %v20_v5 = vld [vmem:[%s233_s1 + $0x8] sm:$0xff]  ;;  %v40_v23 = vld [vmem:[%s234_s2 + $0x10] sm:$0xff]  ;;  %v38_v24 = vld [vmem:[%s234_s2] sm:$0xff] }
   0x3   :  { %v24_v1 = vstv %s23_s17  ;;  %v41_v26 = vld [vmem:[%s234_s2 + $0x18] sm:$0xff]  ;;  %v39_v29 = vld [vmem:[%s234_s2 + $0x8] sm:$0xff]  ;;  %v126_v35 = vld [vmem:[%s235_s3] ss:$0 sm:$0xff] }
   0x4   :  { %138 = vrcp.f32 %v24_v1 }
   0xe   :  { %v139_v6 = vpop.eup %138 }
   0xf   :  { %v28_v7 = vmul.f32 %v139_v6, %v21_v2  ;;  %v26_v8 = vmul.f32 %v139_v6, %v19_v3  ;;  %v29_v9 = vmul.f32 %v139_v6, %v22_v4  ;;  %v27_v10 = vmul.f32 %v139_v6, %v20_v5 }
  0x11   :  { %v34_v11 = vmul.f32 1.442695, %v28_v7  ;;  %v30_v12 = vmul.f32 1.442695, %v26_v8  ;;  %v36_v13 = vmul.f32 1.442695, %v29_v9 }
  0x12   :  { %v32_v14 = vmul.f32 1.442695, %v27_v10 }
  0x13   :  { %140 = vpow2.f32 %v34_v11 }
  0x14   :  { %142 = vpow2.f32 %v30_v12 }
  0x15   :  { %144 = vpow2.f32 %v36_v13 }
  0x16   :  { %146 = vpow2.f32 %v32_v14 }
  0x1d   :  { %v141_v15 = vpop.eup %140 }
  0x1e   :  { %v143_v16 = vpop.eup %142  ;;  %v44_v17 = vadd.f32 1.0, %v141_v15 }
  0x1f   :  { %v145_v18 = vpop.eup %144  ;;  %v42_v19 = vadd.f32 1.0, %v143_v16 }
  0x20   :  { %v147_v20 = vpop.eup %146  ;;  %148 = vrcp.f32 %v44_v17  ;;  %v45_v21 = vadd.f32 1.0, %v145_v18 }
  0x21   :  { %150 = vrcp.f32 %v42_v19  ;;  %v43_v22 = vadd.f32 1.0, %v147_v20 }
  0x22   :  { %152 = vrcp.f32 %v45_v21 }
  0x23   :  { %154 = vrcp.f32 %v43_v22 }
  0x2a   :  { %v149_v25 = vpop.eup %148 }
  0x2b   :  { %v151_v27 = vpop.eup %150  ;;  %v51_v28 = vmul.f32 %v149_v25, %v40_v23 }
  0x2c   :  { %v153_v30 = vpop.eup %152  ;;  %v47_v31 = vmul.f32 %v151_v27, %v38_v24 }
  0x2d   :  { %v155_v32 = vpop.eup %154  ;;  %67 = vperm.xlu1 %137, %v51_v28   ;;  %v53_v33 = vmul.f32 %v153_v30, %v41_v26 }
  0x2e   :  { %57 = vperm.xlu0 %136, %v47_v31   ;;  %v49_v34 = vmul.f32 %v155_v32, %v39_v29 }
  0x31   :  { %72 = vperm.xlu1 %137, %v53_v33  }
  0x32   :  { %62 = vperm.xlu0 %136, %v49_v34  }
  0xac   :  { %v68_v36 = vpop.permute.xlu1 %67 }
  0xad   :  { %v83_v37 = vmul.f32 %v126_v35, %v68_v36  ;;  %v58_v38 = vpop.permute.xlu0 %57 }
  0xae   :  { %v81_v39 = vmul.f32 %v126_v35, %v58_v38 }
  0xaf   :  { %v87_v40 = vsub.f32 0.0, %v83_v37 }
  0xb0   :  { %v85_v41 = vsub.f32 0.0, %v81_v39  ;;  %v73_v42 = vpop.permute.xlu1 %72 }
  0xb1   :  { %v93_v43 = vmul.f32 1.442695, %v87_v40  ;;  %v84_v44 = vmul.f32 %v126_v35, %v73_v42  ;;  %v63_v45 = vpop.permute.xlu0 %62 }
  0xb2   :  { %v89_v46 = vmul.f32 1.442695, %v85_v41  ;;  %v82_v47 = vmul.f32 %v126_v35, %v63_v45 }
  0xb3   :  { %156 = vpow2.f32 %v93_v43  ;;  %v88_v48 = vsub.f32 0.0, %v84_v44 }
  0xb4   :  { %158 = vpow2.f32 %v89_v46  ;;  %v86_v49 = vsub.f32 0.0, %v82_v47 }
  0xb5   :  { %v95_v50 = vmul.f32 1.442695, %v88_v48 }
  0xb6   :  { %v91_v51 = vmul.f32 1.442695, %v86_v49 }
  0xb7   :  { %160 = vpow2.f32 %v95_v50 }
  0xb8   :  { %162 = vpow2.f32 %v91_v51 }
  0xbd   :  { %v157_v52 = vpop.eup %156 }
  0xbe   :  { %v159_v53 = vpop.eup %158  ;;  %v99_v54 = vsub.f32 1.0, %v157_v52 }
  0xbf   :  { %v97_v55 = vsub.f32 1.0, %v159_v53 }
  0xc0   :  { %v133_v56 = vpack.c.bf16 %v99_v54, %v99_v54 }
  0xc1   :  { %v161_v57 = vpop.eup %160  ;;  %v131_v58 = vpack.c.bf16 %v97_v55, %v97_v55 }
  0xc2   :  { %v163_v59 = vpop.eup %162  ;;  %120 = vst.msk [vmem:[%s236_s4 + $0x8] sm:$0xf] %vm117_vm0, %v133_v56  ;;  %v100_v60 = vsub.f32 1.0, %v161_v57 }
  0xc3   :  { %118 = vst.msk [vmem:[%s236_s4] sm:$0xf] %vm117_vm0, %v131_v58  ;;  %v98_v61 = vsub.f32 1.0, %v163_v59 }
  0xc4   :  { %v134_v62 = vpack.c.bf16 %v100_v60, %v100_v60 }
  0xc5   :  { %v132_v63 = vpack.c.bf16 %v98_v61, %v98_v61 }
  0xc6   :  { %121 = vst.msk [vmem:[%s236_s4 + $0xc] sm:$0xf] %vm117_vm0, %v134_v62 }
  0xc7   :  { %119 = vst.msk [vmem:[%s236_s4 + $0x4] sm:$0xf] %vm117_vm0, %v132_v63 }

</bundles_post_ra>
